<compile_context>
chip_gen: v7x
topology: tpu7x:2x2x1
jax: 0.10.0
libtpu: 0.0.40
codegen_flags: <defaults>
</compile_context>

<pallas_src>
import functools

import jax
import jax.numpy as jnp
from jax import lax
from jax.experimental import pallas as pl
from jax.experimental.pallas import tpu as pltpu

EPS = 1e-5
LANE = 128
SUBLANE = 16            # bf16 sublane packing
TILE_B_MAX = 1024       # rows per grid step (cap)
TARGET_GRID_STEPS = 8   # keep >=2 (ideally 4-8) steps so v7x's 2 TCs split the batch
NEG_BIG = -1e30         # bias for padded logit lanes -> exp underflows to exactly 0


def _round_up(x, m):
    return ((x + m - 1) // m) * m


def _layer_norm(x):
    """F.layer_norm over the last dim, no affine, biased variance, eps=1e-5.
    Two-pass (centered) variance to match PyTorch and avoid cancellation."""
    mean = jnp.mean(x, axis=-1, keepdims=True)
    xc = x - mean
    var = jnp.mean(xc * xc, axis=-1, keepdims=True)
    return xc * lax.rsqrt(var + EPS)


def actor_discrete_kernel(obs_ref, w1_ref, b1_ref, w2_ref, b2_ref,
                          w3_ref, b3_ref, out_ref, *, action_dim):
    # NOTE: trick['feature_norm'] computes F.layer_norm(obs, ...) in the
    # PyTorch code but the result is discarded before use -> skipped.

    # obs arrives f32 from HBM; cast to bf16 in-kernel (VPU work, hidden
    # under DMA/MXU slack) so the wrapper does not need an extra cast pass.
    obs = obs_ref[...].astype(jnp.bfloat16)

    # Layer 1: Linear + ReLU + LayerNorm (bf16 MXU operands, f32 accumulation)
    h = jnp.dot(obs, w1_ref[...], preferred_element_type=jnp.float32) + b1_ref[...]
    h = jnp.maximum(h, 0.0)
    h = _layer_norm(h)

    # Layer 2: Linear + ReLU + LayerNorm
    h = jnp.dot(h.astype(jnp.bfloat16), w2_ref[...],
                preferred_element_type=jnp.float32) + b2_ref[...]
    h = jnp.maximum(h, 0.0)
    h = _layer_norm(h)

    # Output layer: Linear over lane-padded action columns, exact softmax.
    logits = jnp.dot(h.astype(jnp.bfloat16), w3_ref[...],
                     preferred_element_type=jnp.float32) + b3_ref[...]
    m = jnp.max(logits, axis=-1, keepdims=True)
    e = jnp.exp(logits - m)                       # padded lanes -> exactly 0
    denom = jnp.sum(e, axis=-1, keepdims=True)
    probs = e / denom                             # EXACT divide: rows sum to 1
    # Store only the real action columns (unpadded, narrow masked store).
    out_ref[...] = probs[:, :action_dim]


def prepare_actor_params(params):
    """One-time (per policy update) conversion to kernel-ready weights:
    lane-pad the output layer and cast matmul weights to bf16. Cache the
    result across rollout forward calls."""
    w1, b1, w2, b2, w3, b3 = (params[k] for k in ("w1", "b1", "w2", "b2", "w3", "b3"))
    H2, action_dim = w3.shape
    pad_a = _round_up(action_dim, LANE)
    w3p = jnp.zeros((H2, pad_a), jnp.float32).at[:, :action_dim].set(w3)
    b3p = jnp.full((1, pad_a), NEG_BIG, jnp.float32).at[:, :action_dim].set(
        b3.reshape(1, -1))
    return {
        "w1": w1.astype(jnp.bfloat16),
        "b1": b1.reshape(1, -1).astype(jnp.float32),
        "w2": w2.astype(jnp.bfloat16),
        "b2": b2.reshape(1, -1).astype(jnp.float32),
        "w3": w3p.astype(jnp.bfloat16),
        "b3": b3p,
        "action_dim": int(action_dim),
    }


def actor_discrete_forward(obs, prepared):
    """obs: (B, obs_dim) float32. prepared: output of prepare_actor_params.
    Returns action probabilities (B, action_dim) float32."""
    w1, b1, w2, b2, w3, b3 = (prepared[k] for k in ("w1", "b1", "w2", "b2", "w3", "b3"))
    action_dim = prepared["action_dim"]
    B, obs_dim = obs.shape
    H1 = w1.shape[1]
    H2 = w2.shape[1]
    pad_a = w3.shape[1]

    # Adaptive batch tile: big enough to amortize per-step overhead, small
    # enough to give >= TARGET_GRID_STEPS steps for megacore + pipelining.
    tile_b = min(TILE_B_MAX,
                 _round_up(max(1, pl.cdiv(B, TARGET_GRID_STEPS)), SUBLANE))
    grid_b = pl.cdiv(B, tile_b)
    B_pad = grid_b * tile_b
    obs_p = obs if B_pad == B else jnp.pad(obs, ((0, B_pad - B), (0, 0)))

    cost = pl.CostEstimate(
        flops=2 * B_pad * (obs_dim * H1 + H1 * H2 + H2 * pad_a),
        transcendentals=B_pad * (pad_a + 2),           # exp row + 2 rsqrt per row
        bytes_accessed=(obs_p.size * 4 + B_pad * action_dim * 4
                        + (w1.size + w2.size + w3.size) * 2
                        + (b1.size + b2.size + b3.size) * 4),
    )

    kernel = functools.partial(actor_discrete_kernel, action_dim=action_dim)
    out = pl.pallas_call(
        kernel,
        out_shape=jax.ShapeDtypeStruct((B_pad, action_dim), jnp.float32),
        grid=(grid_b,),
        in_specs=[
            pl.BlockSpec((tile_b, obs_dim), lambda i: (i, 0)),   # obs: streamed
            pl.BlockSpec((obs_dim, H1), lambda i: (0, 0)),       # weights: VMEM-resident
            pl.BlockSpec((1, H1), lambda i: (0, 0)),
            pl.BlockSpec((H1, H2), lambda i: (0, 0)),
            pl.BlockSpec((1, H2), lambda i: (0, 0)),
            pl.BlockSpec((H2, pad_a), lambda i: (0, 0)),
            pl.BlockSpec((1, pad_a), lambda i: (0, 0)),
        ],
        # Unpadded, narrow output block: ~16x less HBM write traffic than a
        # 128-lane padded f32 slab + wrapper-side slice pass.
        out_specs=pl.BlockSpec((tile_b, action_dim), lambda i: (i, 0)),
        compiler_params=pltpu.CompilerParams(
            dimension_semantics=("parallel",)),
        cost_estimate=cost,
    )(obs_p, w1, b1, w2, b2, w3, b3)

    return out if B_pad == B else out[:B]


# ---------------------------------------------------------------------------
# Parameter init (matches nn.init.orthogonal_ + zero bias, stored as (in, out))
# ---------------------------------------------------------------------------
def _orthogonal(key, shape, gain):
    out_f, in_f = shape
    n_rows, n_cols = max(out_f, in_f), min(out_f, in_f)
    a = jax.random.normal(key, (n_rows, n_cols), dtype=jnp.float32)
    q, r = jnp.linalg.qr(a)
    q = q * jnp.sign(jnp.diagonal(r))
    w = q if out_f >= in_f else q.T          # (out_f, in_f)
    return (gain * w).T.astype(jnp.float32)  # stored as (in_f, out_f)


def init_actor_params(key, obs_dim, action_dim, hidden_1=128, hidden_2=128):
    k1, k2, k3 = jax.random.split(key, 3)
    relu_gain = jnp.sqrt(2.0)  # nn.init.calculate_gain('relu')
    return {
        "w1": _orthogonal(k1, (hidden_1, obs_dim), relu_gain),
        "b1": jnp.zeros((1, hidden_1), jnp.float32),
        "w2": _orthogonal(k2, (hidden_2, hidden_1), relu_gain),
        "b2": jnp.zeros((1, hidden_2), jnp.float32),
        "w3": _orthogonal(k3, (action_dim, hidden_2), 0.01),
        "b3": jnp.zeros((1, action_dim), jnp.float32),
    }


def reference_forward(obs, params):
    """Pure-JAX f32 reference (matches the PyTorch forward)."""
    h = jnp.maximum(obs @ params["w1"] + params["b1"], 0.0)
    h = _layer_norm(h)
    h = jnp.maximum(h @ params["w2"] + params["b2"], 0.0)
    h = _layer_norm(h)
    logits = h @ params["w3"] + params["b3"]
    return jax.nn.softmax(logits, axis=-1)


if __name__ == "__main__":
    key = jax.random.PRNGKey(0)
    k_obs, k_params = jax.random.split(key)

    B, OBS_DIM, ACTION_DIM = 8, 16, 8
    HIDDEN_1 = HIDDEN_2 = 128

    obs = jax.random.normal(k_obs, (B, OBS_DIM), dtype=jnp.float32)
    params = init_actor_params(k_params, OBS_DIM, ACTION_DIM, HIDDEN_1, HIDDEN_2)

    prepared = prepare_actor_params(params)   # cache across rollout calls
    a_prob = actor_discrete_forward(obs, prepared)
    a_prob = jax.block_until_ready(a_prob)

    ref = reference_forward(obs, params)
    assert a_prob.shape == (B, ACTION_DIM)
    # Exact f32 normalization -> rows sum to 1 to f32 precision.
    assert jnp.allclose(jnp.sum(a_prob, axis=-1), 1.0, atol=1e-4)
    # bf16 matmul operands (f32 accumulation) -> small deviation from f32 ref.
    assert jnp.allclose(a_prob, ref, atol=5e-3)

    print("KERNEL_OK")
</pallas_src>

<mosaic_0001>
module attributes {stable_mosaic.version = 11 : i64} {
  func.func @actor_discrete_kernel(%arg0: i32, %arg1: memref<16x16xf32, #tpu.memory_space<vmem>>, %arg2: memref<16x128xbf16, #tpu.memory_space<vmem>>, %arg3: memref<1x128xf32, #tpu.memory_space<vmem>>, %arg4: memref<128x128xbf16, #tpu.memory_space<vmem>>, %arg5: memref<1x128xf32, #tpu.memory_space<vmem>>, %arg6: memref<128x128xbf16, #tpu.memory_space<vmem>>, %arg7: memref<1x128xf32, #tpu.memory_space<vmem>>, %arg8: memref<16x8xf32, #tpu.memory_space<vmem>>) attributes {dimension_semantics = [#tpu.dimension_semantics<parallel>], iteration_bounds = array<i64: 1>, scalar_prefetch = 0 : i64, scratch_operands = 0 : i64, tpu.core_type = #tpu.core_type<tc>, window_params = [{transform_indices = @transform_0, window_bounds = array<i64: 16, 16>}, {pipeline_mode = #tpu.pipeline_mode<synchronous>, transform_indices = @transform_1, window_bounds = array<i64: 16, 128>}, {pipeline_mode = #tpu.pipeline_mode<synchronous>, transform_indices = @transform_2, window_bounds = array<i64: 1, 128>}, {pipeline_mode = #tpu.pipeline_mode<synchronous>, transform_indices = @transform_3, window_bounds = array<i64: 128, 128>}, {pipeline_mode = #tpu.pipeline_mode<synchronous>, transform_indices = @transform_4, window_bounds = array<i64: 1, 128>}, {pipeline_mode = #tpu.pipeline_mode<synchronous>, transform_indices = @transform_5, window_bounds = array<i64: 128, 128>}, {pipeline_mode = #tpu.pipeline_mode<synchronous>, transform_indices = @transform_6, window_bounds = array<i64: 1, 128>}, {transform_indices = @transform_7, window_bounds = array<i64: 16, 8>}]} {
    %c0 = arith.constant 0 : index
    %c0_0 = arith.constant 0 : index
    %0 = vector.load %arg1[%c0, %c0_0] : memref<16x16xf32, #tpu.memory_space<vmem>>, vector<16x16xf32>
    %1 = arith.truncf %0 : vector<16x16xf32> to vector<16x16xbf16>
    %c0_1 = arith.constant 0 : index
    %c0_2 = arith.constant 0 : index
    %2 = vector.load %arg2[%c0_1, %c0_2] : memref<16x128xbf16, #tpu.memory_space<vmem>>, vector<16x128xbf16>
    %cst = arith.constant dense<0.000000e+00> : vector<16x128xf32>
    %3 = tpu.matmul %1, %2, %cst {dimension_numbers = #tpu.dot_dimension_numbers<[1], [0], [0], [1], [0, 0, 1, 1], [], []>} : vector<16x16xbf16>, vector<16x128xbf16>, vector<16x128xf32> -> vector<16x128xf32>
    %c0_3 = arith.constant 0 : index
    %c0_4 = arith.constant 0 : index
    %4 = vector.load %arg3[%c0_3, %c0_4] : memref<1x128xf32, #tpu.memory_space<vmem>>, vector<1x128xf32>
    %5 = vector.broadcast %4 : vector<1x128xf32> to vector<16x128xf32>
    %6 = arith.addf %3, %5 : vector<16x128xf32>
    %cst_5 = arith.constant 0.000000e+00 : f32
    %7 = vector.broadcast %cst_5 : f32 to vector<16x128xf32>
    %8 = arith.maximumf %6, %7 : vector<16x128xf32>
    %cst_6 = arith.constant dense<0.000000e+00> : vector<16xf32>
    %9 = vector.multi_reduction <add>, %8, %cst_6 [1] : vector<16x128xf32> to vector<16xf32>
    %10 = vector.shape_cast %9 : vector<16xf32> to vector<16x1xf32>
    %cst_7 = arith.constant 1.280000e+02 : f32
    %11 = vector.broadcast %cst_7 : f32 to vector<16x1xf32>
    %12 = arith.divf %10, %11 : vector<16x1xf32>
    %13 = vector.broadcast %12 : vector<16x1xf32> to vector<16x128xf32>
    %14 = arith.subf %8, %13 : vector<16x128xf32>
    %15 = arith.mulf %14, %14 : vector<16x128xf32>
    %cst_8 = arith.constant dense<0.000000e+00> : vector<16xf32>
    %16 = vector.multi_reduction <add>, %15, %cst_8 [1] : vector<16x128xf32> to vector<16xf32>
    %17 = vector.shape_cast %16 : vector<16xf32> to vector<16x1xf32>
    %cst_9 = arith.constant 1.280000e+02 : f32
    %18 = vector.broadcast %cst_9 : f32 to vector<16x1xf32>
    %19 = arith.divf %17, %18 : vector<16x1xf32>
    %cst_10 = arith.constant 9.99999974E-6 : f32
    %20 = vector.broadcast %cst_10 : f32 to vector<16x1xf32>
    %21 = arith.addf %19, %20 : vector<16x1xf32>
    %22 = math.rsqrt %21 : vector<16x1xf32>
    %23 = vector.broadcast %22 : vector<16x1xf32> to vector<16x128xf32>
    %24 = arith.mulf %14, %23 : vector<16x128xf32>
    %25 = arith.truncf %24 : vector<16x128xf32> to vector<16x128xbf16>
    %c0_11 = arith.constant 0 : index
    %c0_12 = arith.constant 0 : index
    %26 = vector.load %arg4[%c0_11, %c0_12] : memref<128x128xbf16, #tpu.memory_space<vmem>>, vector<128x128xbf16>
    %cst_13 = arith.constant dense<0.000000e+00> : vector<16x128xf32>
    %27 = tpu.matmul %25, %26, %cst_13 {dimension_numbers = #tpu.dot_dimension_numbers<[1], [0], [0], [1], [0, 0, 1, 1], [], []>} : vector<16x128xbf16>, vector<128x128xbf16>, vector<16x128xf32> -> vector<16x128xf32>
    %c0_14 = arith.constant 0 : index
    %c0_15 = arith.constant 0 : index
    %28 = vector.load %arg5[%c0_14, %c0_15] : memref<1x128xf32, #tpu.memory_space<vmem>>, vector<1x128xf32>
    %29 = vector.broadcast %28 : vector<1x128xf32> to vector<16x128xf32>
    %30 = arith.addf %27, %29 : vector<16x128xf32>
    %cst_16 = arith.constant 0.000000e+00 : f32
    %31 = vector.broadcast %cst_16 : f32 to vector<16x128xf32>
    %32 = arith.maximumf %30, %31 : vector<16x128xf32>
    %cst_17 = arith.constant dense<0.000000e+00> : vector<16xf32>
    %33 = vector.multi_reduction <add>, %32, %cst_17 [1] : vector<16x128xf32> to vector<16xf32>
    %34 = vector.shape_cast %33 : vector<16xf32> to vector<16x1xf32>
    %cst_18 = arith.constant 1.280000e+02 : f32
    %35 = vector.broadcast %cst_18 : f32 to vector<16x1xf32>
    %36 = arith.divf %34, %35 : vector<16x1xf32>
    %37 = vector.broadcast %36 : vector<16x1xf32> to vector<16x128xf32>
    %38 = arith.subf %32, %37 : vector<16x128xf32>
    %39 = arith.mulf %38, %38 : vector<16x128xf32>
    %cst_19 = arith.constant dense<0.000000e+00> : vector<16xf32>
    %40 = vector.multi_reduction <add>, %39, %cst_19 [1] : vector<16x128xf32> to vector<16xf32>
    %41 = vector.shape_cast %40 : vector<16xf32> to vector<16x1xf32>
    %cst_20 = arith.constant 1.280000e+02 : f32
    %42 = vector.broadcast %cst_20 : f32 to vector<16x1xf32>
    %43 = arith.divf %41, %42 : vector<16x1xf32>
    %cst_21 = arith.constant 9.99999974E-6 : f32
    %44 = vector.broadcast %cst_21 : f32 to vector<16x1xf32>
    %45 = arith.addf %43, %44 : vector<16x1xf32>
    %46 = math.rsqrt %45 : vector<16x1xf32>
    %47 = vector.broadcast %46 : vector<16x1xf32> to vector<16x128xf32>
    %48 = arith.mulf %38, %47 : vector<16x128xf32>
    %49 = arith.truncf %48 : vector<16x128xf32> to vector<16x128xbf16>
    %c0_22 = arith.constant 0 : index
    %c0_23 = arith.constant 0 : index
    %50 = vector.load %arg6[%c0_22, %c0_23] : memref<128x128xbf16, #tpu.memory_space<vmem>>, vector<128x128xbf16>
    %cst_24 = arith.constant dense<0.000000e+00> : vector<16x128xf32>
    %51 = tpu.matmul %49, %50, %cst_24 {dimension_numbers = #tpu.dot_dimension_numbers<[1], [0], [0], [1], [0, 0, 1, 1], [], []>} : vector<16x128xbf16>, vector<128x128xbf16>, vector<16x128xf32> -> vector<16x128xf32>
    %c0_25 = arith.constant 0 : index
    %c0_26 = arith.constant 0 : index
    %52 = vector.load %arg7[%c0_25, %c0_26] : memref<1x128xf32, #tpu.memory_space<vmem>>, vector<1x128xf32>
    %53 = vector.broadcast %52 : vector<1x128xf32> to vector<16x128xf32>
    %54 = arith.addf %51, %53 : vector<16x128xf32>
    %cst_27 = arith.constant dense<0xFF800000> : vector<16xf32>
    %55 = vector.multi_reduction <maximumf>, %54, %cst_27 [1] : vector<16x128xf32> to vector<16xf32>
    %56 = vector.shape_cast %55 : vector<16xf32> to vector<16x1xf32>
    %57 = vector.broadcast %56 : vector<16x1xf32> to vector<16x128xf32>
    %58 = arith.subf %54, %57 : vector<16x128xf32>
    %59 = math.exp %58 : vector<16x128xf32>
    %cst_28 = arith.constant dense<0.000000e+00> : vector<16xf32>
    %60 = vector.multi_reduction <add>, %59, %cst_28 [1] : vector<16x128xf32> to vector<16xf32>
    %61 = vector.shape_cast %60 : vector<16xf32> to vector<16x1xf32>
    %62 = vector.broadcast %61 : vector<16x1xf32> to vector<16x128xf32>
    %63 = arith.divf %59, %62 : vector<16x128xf32>
    %64 = vector.extract_strided_slice %63 {offsets = [0, 0], sizes = [16, 8], strides = [1, 1]} : vector<16x128xf32> to vector<16x8xf32>
    %c0_29 = arith.constant 0 : index
    %c0_30 = arith.constant 0 : index
    %65 = vector.load %arg8[%c0_29, %c0_30] : memref<16x8xf32, #tpu.memory_space<vmem>>, vector<16x8xf32>
    tpu.vector_store %arg8[%c0_29, %c0_30], %64 {strides = array<i32>} : memref<16x8xf32, #tpu.memory_space<vmem>>, vector<16x8xf32>,
    return
  }
  func.func @transform_0(%arg0: i32) -> (i32, i32) {
    %c0_i32 = arith.constant 0 : i32
    %c0_i32_0 = arith.constant 0 : i32
    return %arg0, %c0_i32 : i32, i32
  }
  func.func @transform_1(%arg0: i32) -> (i32, i32) {
    %c0_i32 = arith.constant 0 : i32
    %c0_i32_0 = arith.constant 0 : i32
    %c0_i32_1 = arith.constant 0 : i32
    return %c0_i32, %c0_i32_0 : i32, i32
  }
  func.func @transform_2(%arg0: i32) -> (i32, i32) {
    %c0_i32 = arith.constant 0 : i32
    %c0_i32_0 = arith.constant 0 : i32
    %c0_i32_1 = arith.constant 0 : i32
    return %c0_i32, %c0_i32_0 : i32, i32
  }
  func.func @transform_3(%arg0: i32) -> (i32, i32) {
    %c0_i32 = arith.constant 0 : i32
    %c0_i32_0 = arith.constant 0 : i32
    %c0_i32_1 = arith.constant 0 : i32
    return %c0_i32, %c0_i32_0 : i32, i32
  }
  func.func @transform_4(%arg0: i32) -> (i32, i32) {
    %c0_i32 = arith.constant 0 : i32
    %c0_i32_0 = arith.constant 0 : i32
    %c0_i32_1 = arith.constant 0 : i32
    return %c0_i32, %c0_i32_0 : i32, i32
  }
  func.func @transform_5(%arg0: i32) -> (i32, i32) {
    %c0_i32 = arith.constant 0 : i32
    %c0_i32_0 = arith.constant 0 : i32
    %c0_i32_1 = arith.constant 0 : i32
    return %c0_i32, %c0_i32_0 : i32, i32
  }
  func.func @transform_6(%arg0: i32) -> (i32, i32) {
    %c0_i32 = arith.constant 0 : i32
    %c0_i32_0 = arith.constant 0 : i32
    %c0_i32_1 = arith.constant 0 : i32
    return %c0_i32, %c0_i32_0 : i32, i32
  }
  func.func @transform_7(%arg0: i32) -> (i32, i32) {
    %c0_i32 = arith.constant 0 : i32
    %c0_i32_0 = arith.constant 0 : i32
    return %arg0, %c0_i32 : i32, i32
  }
}

</mosaic_0001>

<bundles_post_ra>
// kernel: tpu_custom_call.1
= control target key start
LH: loop header
LB: loop body
LE: loop exit
PB: predicated region body
PF: predicated region fallthrough
CT: control target
= control target key end

     0   :  { %12 = vsyncpa [#allocation3], 0  ;;  %s821_s0 = inlined_call_operand.hbm [shape: f32[16,16], index: 0, kind: input, shape index: {}]   ;;  %s822_s1 = inlined_call_operand.hbm [shape: bf16[16,128], index: 1, kind: input, shape index: {}]   ;;  %s823_s2 = inlined_call_operand.vmem [shape: f32[1,128], index: 2, kind: input, shape index: {}]   ;;  %s824_s3 = inlined_call_operand.hbm [shape: bf16[128,128], index: 3, kind: input, shape index: {}]   ;;  %s825_s4 = inlined_call_operand.vmem [shape: f32[1,128], index: 4, kind: input, shape index: {}]   ;;  %s826_s5 = inlined_call_operand.hbm [shape: bf16[128,128], index: 5, kind: input, shape index: {}]   ;;  %s827_s6 = inlined_call_operand.vmem [shape: f32[1,128], index: 6, kind: input, shape index: {}]   ;;  %s828_s7 = inlined_call_operand.vmem [shape: f32[16,8], index: 7, kind: output, shape index: {}]  }
   0x1   :  { %13 = vsyncpa [#allocation5], 0 }
   0x2   :  { %14 = vsyncpa [#allocation8], 0  ;;  %s672_s24 = smov [#allocation4]   ;;  %s578_s28 = scalar_lea.hbm %s822_s1, 128 }
   0x3   :  { %s32_s25 = sshll.u32 %s672_s24, 4  ;;  %p579_p0 = scmp.ne.s32.totalorder %s822_s1, %s578_s28  ;;  %s33_s25 = int_to_ptr.vmem [resolvable:$true] %s32_s25 }
   0x4   :  { %p582_p1 = scmp.lt.u32.totalorder %s578_s28, %s822_s1 }
   0x6   :  { %p584_p2 = pnand %p582_p1, %p579_p0 }
   0x8   :  { %587 = shalt.err (!%p584_p2)
}
   0x9   :  { %s588_s10 = scalar_lea.vmem %s33_s25, 128  ;;  %p593_p4 = scmp.lt.s32.totalorder %s33_s25, %s33_s25 }
   0xa   :  { %p589_p3 = scmp.ne.s32.totalorder %s33_s25, %s588_s10  ;;  %p594_p5 = scmp.lt.s32.totalorder %s588_s10, %s588_s10 }
   0xc   :  { %p595_p6 = por %p594_p5, %p593_p4 }
   0xe   :  { %p596_p7 = pnand %p595_p6, %p589_p3 }
  0x10   :  { %599 = shalt.err (!%p596_p7)
}
  0x11   :  { %s673_s11 = smov 64   ;;  %s674_s12 = smov 4  }
  0x12   :  { %38 = dma.hbm_to_vmem [thread:$0]  %s822_s1, 128, %s33_s25, [#allocation5], %s673_s11, %s673_s11, %s674_s12  }
  0x13   :  { %s675_s15 = smov [#allocation2]   ;;  %s600_s19 = scalar_lea.hbm %s821_s0, 256 }
  0x14   :  { %s20_s16 = sshll.u32 %s675_s15, 4  ;;  %p601_p8 = scmp.ne.s32.totalorder %s821_s0, %s600_s19  ;;  %s21_s16 = int_to_ptr.vmem [resolvable:$true] %s20_s16 }
  0x15   :  { %p604_p9 = scmp.lt.u32.totalorder %s600_s19, %s821_s0 }
  0x17   :  { %p606_p10 = pnand %p604_p9, %p601_p8 }
  0x19   :  { %609 = shalt.err (!%p606_p10)
}
  0x1a   :  { %s610_s24 = scalar_lea.vmem %s21_s16, 256  ;;  %p615_p12 = scmp.lt.s32.totalorder %s21_s16, %s21_s16 }
  0x1b   :  { %p611_p11 = scmp.ne.s32.totalorder %s21_s16, %s610_s24  ;;  %p616_p13 = scmp.lt.s32.totalorder %s610_s24, %s610_s24 }
  0x1d   :  { %p617_p0 = por %p616_p13, %p615_p12 }
  0x1f   :  { %p618_p1 = pnand %p617_p0, %p611_p11 }
  0x21   :  { %621 = shalt.err (!%p618_p1)
}
  0x22   :  { %s676_s1 = smov 128   ;;  %s677_s25 = smov 8  }
  0x23   :  { %26 = dma.hbm_to_vmem [thread:$0]  %s821_s0, 256, %s21_s16, [#allocation3], %s676_s1, %s676_s1, %s677_s25  }
  0x24   :  { %s678_s28 = smov [#allocation6]   ;;  %s679_s30 = smov [#allocation7]  }
  0x25   :  { %s46_s29 = sshll.u32 %s678_s28, 4  ;;  %s60_s8 = sshll.u32 %s679_s30, 4  ;;  %s47_s29 = int_to_ptr.vmem [resolvable:$true] %s46_s29  ;;  %s749_s8 = int_to_ptr.vmem [resolvable:$true] %s60_s8 }
  0x26   :  { %s622_s13 = scalar_lea.hbm %s824_s3, 1024 }
  0x27   :  { %p623_p2 = scmp.ne.s32.totalorder %s824_s3, %s622_s13  ;;  %p626_p3 = scmp.lt.u32.totalorder %s622_s13, %s824_s3 }
  0x29   :  { %p628_p4 = pnand %p626_p3, %p623_p2 }
  0x2b   :  { %631 = shalt.err (!%p628_p4)
}
  0x2c   :  { %s632_s0 = scalar_lea.vmem %s47_s29, 1024  ;;  %p637_p6 = scmp.lt.s32.totalorder %s47_s29, %s47_s29 }
  0x2d   :  { %p633_p5 = scmp.ne.s32.totalorder %s47_s29, %s632_s0  ;;  %p638_p7 = scmp.lt.s32.totalorder %s632_s0, %s632_s0 }
  0x2f   :  { %p639_p8 = por %p638_p7, %p637_p6 }
  0x31   :  { %p640_p9 = pnand %p639_p8, %p633_p5 }
  0x33   :  { %643 = shalt.err (!%p640_p9)
}
  0x34   :  { %52 = dma.hbm_to_vmem [thread:$0]  %s824_s3, 1024, %s47_s29, [#allocation5], %s673_s11, %s673_s11, %s674_s12  }
  0x35   :  { %s644_s22 = scalar_lea.hbm %s826_s5, 1024 }
  0x36   :  { %p645_p10 = scmp.ne.s32.totalorder %s826_s5, %s644_s22  ;;  %p648_p11 = scmp.lt.u32.totalorder %s644_s22, %s826_s5 }
  0x38   :  { %p650_p12 = pnand %p648_p11, %p645_p10 }
  0x3a   :  { %653 = shalt.err (!%p650_p12)
}
  0x3b   :  { %s654_s26 = scalar_lea.vmem %s749_s8, 1024  ;;  %p659_p0 = scmp.lt.s32.totalorder %s749_s8, %s749_s8 }
  0x3c   :  { %p655_p13 = scmp.ne.s32.totalorder %s749_s8, %s654_s26  ;;  %p660_p1 = scmp.lt.s32.totalorder %s654_s26, %s654_s26 }
  0x3e   :  { %p661_p2 = por %p660_p1, %p659_p0 }
  0x40   :  { %p662_p3 = pnand %p661_p2, %p655_p13 }
  0x42   :  { %665 = shalt.err (!%p662_p3)
}
  0x43   :  { %66 = dma.hbm_to_vmem [thread:$0]  %s826_s5, 1024, %s749_s8, [#allocation8], %s673_s11, %s673_s11, %s674_s12  }
  0x44   :  { %666 = dma.done.wait [#allocation3], 256  }
  0x45   :  { %667 = vsyncadd [#allocation3], 4294967040 }
  0x46   :  { %668 = dma.done.wait [#allocation5], 1152  }
  0x47   :  { %669 = vsyncadd [#allocation5], 4294966144 }
  0x48   :  { %670 = dma.done.wait [#allocation8], 1024  }
  0x49   :  { %671 = vsyncadd [#allocation8], 4294966272  ;;  %v680_v0 = vmov 0.0   ;;  %vm681_vm0 = vmmov 0   ;;  %v545_v1 = vld [vmem:[#allocation4] sm:$0xff]   ;;  %v82_v2 = vld [vmem:[#allocation2] sm:$0xff] }
  0x4a   :  { %489 = vmatprep.subr.bf16.mxu0 %v680_v0  ;;  %491 = vmatprep.mubr.msk.bf16.mxu0 %vm681_vm0, %v680_v0  ;;  %v83_v3 = vld [vmem:[#allocation2 + $0x8] sm:$0xff]  ;;  %vm100_vm1 = vcmask 130048   ;;  %v448_v5 = vld [vmem:[%s823_s2] ss:$0 sm:$0xff]  ;;  %v546_v14 = vld [vmem:[#allocation6] sm:$0xff]   ;;  %vm438_vm2 = vcmask 64512  }
  0x4b   :  { %495 = vmatprep.subr.bf16.mxu1 %v680_v0  ;;  %511 = vmatprep.mubr.msk.bf16.mxu1 %vm681_vm0, %v680_v0  ;;  %v84_v4 = vpack.c.bf16 %v83_v3, %v82_v2  ;;  %v547_v15 = vld [vmem:[#allocation6 + $0x8] sm:$0xff]   ;;  %v548_v24 = vld [vmem:[#allocation6 + $0x10] sm:$0xff]   ;;  %v549_v25 = vld [vmem:[#allocation6 + $0x18] sm:$0xff]  }
  0x4c   :  { %490 = vmatpush3.bf16.msra.mxu0 %v545_v1  ;;  %496 = vmatpush3.bf16.msra.mxu1 %v546_v14  ;;  %v550_v26 = vld [vmem:[#allocation6 + $0x20] sm:$0xff]   ;;  %v551_v27 = vld [vmem:[#allocation6 + $0x28] sm:$0xff]   ;;  %v552_v28 = vld [vmem:[#allocation6 + $0x30] sm:$0xff]  }
  0x4d   :  { %515 = vmatprep.subr.bf16.mxu0 %v680_v0  ;;  %497 = vmatprep.subr.bf16.mxu1 %v680_v0  ;;  %v553_v29 = vld [vmem:[#allocation6 + $0x38] sm:$0xff]   ;;  %v451_v41 = vld [vmem:[%s825_s4] ss:$0 sm:$0xff]  ;;  %v554_v50 = vld [vmem:[#allocation7] sm:$0xff]  }
  0x4e   :  { %v555_v51 = vld [vmem:[#allocation7 + $0x8] sm:$0xff]   ;;  %v556_v52 = vld [vmem:[#allocation7 + $0x10] sm:$0xff]   ;;  %v557_v61 = vld [vmem:[#allocation7 + $0x18] sm:$0xff]  }
  0x4f   :  { %492 = vmatmul.mubr.msk.bf16.vlgmr.msra.gmra.mrb[0].mxu0 %vm100_vm1, %v84_v4  ;;  %v558_v62 = vld [vmem:[#allocation7 + $0x20] sm:$0xff]   ;;  %v559_v63 = vld [vmem:[#allocation7 + $0x28] sm:$0xff]   ;;  %v560_v1 = vld [vmem:[#allocation7 + $0x30] sm:$0xff]  }
  0x50   :  { %531 = vmatprep.mubr.msk.bf16.mxu0 %vm681_vm0, %v680_v0  ;;  %498 = vmatpush3.bf16.msra.mxu1 %v547_v15  ;;  %v561_v2 = vld [vmem:[#allocation7 + $0x38] sm:$0xff]   ;;  %v460_v14 = vld [vmem:[%s827_s6] ss:$0 sm:$0xff] }
  0x51   :  { %499 = vmatprep.subr.bf16.mxu1 %v680_v0  ;;  %516 = vmatpush3.bf16.msra.mxu0 %v554_v50 }
  0x52   :  { %517 = vmatprep.subr.bf16.mxu0 %v680_v0 }
  0x54   :  { %500 = vmatpush3.bf16.msra.mxu1 %v548_v24 }
  0x55   :  { %501 = vmatprep.subr.bf16.mxu1 %v680_v0  ;;  %518 = vmatpush3.bf16.msra.mxu0 %v555_v51 }
  0x56   :  { %519 = vmatprep.subr.bf16.mxu0 %v680_v0 }
  0x58   :  { %502 = vmatpush3.bf16.msra.mxu1 %v549_v25 }
  0x59   :  { %503 = vmatprep.subr.bf16.mxu1 %v680_v0  ;;  %520 = vmatpush3.bf16.msra.mxu0 %v556_v52 }
  0x5a   :  { %521 = vmatprep.subr.bf16.mxu0 %v680_v0 }
  0x5c   :  { %504 = vmatpush3.bf16.msra.mxu1 %v550_v26 }
  0x5d   :  { %505 = vmatprep.subr.bf16.mxu1 %v680_v0  ;;  %522 = vmatpush3.bf16.msra.mxu0 %v557_v61 }
  0x5e   :  { %523 = vmatprep.subr.bf16.mxu0 %v680_v0 }
  0x60   :  { %506 = vmatpush3.bf16.msra.mxu1 %v551_v27 }
  0x61   :  { %507 = vmatprep.subr.bf16.mxu1 %v680_v0  ;;  %524 = vmatpush3.bf16.msra.mxu0 %v558_v62 }
  0x62   :  { %525 = vmatprep.subr.bf16.mxu0 %v680_v0 }
  0x64   :  { %508 = vmatpush3.bf16.msra.mxu1 %v552_v28 }
  0x65   :  { %509 = vmatprep.subr.bf16.mxu1 %v680_v0  ;;  %526 = vmatpush3.bf16.msra.mxu0 %v559_v63 }
  0x66   :  { %527 = vmatprep.subr.bf16.mxu0 %v680_v0 }
  0x68   :  { %510 = vmatpush3.bf16.msra.mxu1 %v553_v29 }
  0x69   :  { %528 = vmatpush3.bf16.msra.mxu0 %v560_v1 }
  0x6a   :  { %529 = vmatprep.subr.bf16.mxu0 %v680_v0 }
  0x6d   :  { %530 = vmatpush3.bf16.msra.mxu0 %v561_v2 }
 0x122   :  { %v138_v6 = vpop.f32.mrb[0].mxu0 }
 0x123   :  { %v139_v7 = vadd.f32 %v448_v5, %v138_v6  ;;  %v493_v8 = vpop.f32.mrb[1].mxu0 }
 0x124   :  { %v141_v9 = vpop.f32.mrb[2].mxu0 }
 0x125   :  { %v145_v10 = vmax.f32 %v139_v7, 0.0  ;;  %v142_v11 = vadd.f32 %v448_v5, %v141_v9  ;;  %v494_v12 = vpop.f32.mrb[3].mxu0 }
 0x127   :  { %147 = vadd.xlane.f32.xlu0 %v145_v10  ;;  %v146_v13 = vmax.f32 %v142_v11, 0.0 }
 0x12b   :  { %149 = vadd.xlane.f32.xlu0 %v146_v13 }
 0x1b4   :  { %v148_v16 = vpop.xlane.xlu0 %147 }
 0x1b5   :  { %v152_v17 = vmul.f32 0.0078125, %v148_v16 }
 0x1b7   :  { %v154_v18 = vsub.f32 %v145_v10, %v152_v17 }
 0x1b8   :  { %v150_v19 = vpop.xlane.xlu0 %149 }
 0x1b9   :  { %v153_v20 = vmul.f32 0.0078125, %v150_v19  ;;  %v156_v21 = vmul.f32 %v154_v18, %v154_v18 }
 0x1bb   :  { %v155_v22 = vsub.f32 %v146_v13, %v153_v20  ;;  %158 = vadd.xlane.f32.xlu1 %v156_v21 }
 0x1bd   :  { %v157_v23 = vmul.f32 %v155_v22, %v155_v22 }
 0x1bf   :  { %160 = vadd.xlane.f32.xlu1 %v157_v23 }
 0x248   :  { %v159_v30 = vpop.xlane.xlu1 %158 }
 0x249   :  { %v162_v31 = vmul.f32 0.0078125, %v159_v30 }
 0x24b   :  { %v164_v32 = vadd.f32 1e-05, %v162_v31 }
 0x24c   :  { %v161_v33 = vpop.xlane.xlu1 %160 }
 0x24d   :  { %v163_v34 = vmul.f32 0.0078125, %v161_v33  ;;  %562 = vrsqrt.f32 %v164_v32 }
 0x24f   :  { %v165_v35 = vadd.f32 1e-05, %v163_v34 }
 0x251   :  { %564 = vrsqrt.f32 %v165_v35 }
 0x257   :  { %v563_v36 = vpop.eup %562 }
 0x258   :  { %v168_v38 = vmul.f32 %v563_v36, %v154_v18 }
 0x25b   :  { %v565_v37 = vpop.eup %564 }
 0x25c   :  { %v169_v39 = vmul.f32 %v565_v37, %v155_v22 }
 0x25e   :  { %v170_v40 = vpack.c.bf16 %v169_v39, %v168_v38 }
 0x260   :  { %512 = vmatmul.mubr.bf16.vlgmr.msra.gmra.mrb[0].mxu1 %v170_v40 }
 0x333   :  { %v276_v42 = vpop.f32.mrb[0].mxu1 }
 0x334   :  { %v277_v43 = vadd.f32 %v451_v41, %v276_v42  ;;  %v513_v44 = vpop.f32.mrb[1].mxu1 }
 0x335   :  { %v279_v45 = vpop.f32.mrb[2].mxu1 }
 0x336   :  { %v283_v46 = vmax.f32 %v277_v43, 0.0  ;;  %v280_v47 = vadd.f32 %v451_v41, %v279_v45  ;;  %v514_v48 = vpop.f32.mrb[3].mxu1 }
 0x338   :  { %v284_v49 = vmax.f32 %v280_v47, 0.0  ;;  %285 = vadd.xlane.f32.xlu0 %v283_v46 }
 0x33a   :  { %287 = vadd.xlane.f32.xlu1 %v284_v49 }
 0x3c5   :  { %v286_v53 = vpop.xlane.xlu0 %285 }
 0x3c6   :  { %v289_v54 = vmul.f32 0.0078125, %v286_v53 }
 0x3c7   :  { %v288_v55 = vpop.xlane.xlu1 %287 }
 0x3c8   :  { %v291_v56 = vsub.f32 %v283_v46, %v289_v54  ;;  %v290_v57 = vmul.f32 0.0078125, %v288_v55 }
 0x3ca   :  { %v292_v58 = vsub.f32 %v284_v49, %v290_v57  ;;  %v293_v59 = vmul.f32 %v291_v56, %v291_v56 }
 0x3cc   :  { %295 = vadd.xlane.f32.xlu0 %v293_v59  ;;  %v294_v60 = vmul.f32 %v292_v58, %v292_v58 }
 0x3ce   :  { %297 = vadd.xlane.f32.xlu1 %v294_v60 }
 0x459   :  { %v296_v3 = vpop.xlane.xlu0 %295 }
 0x45a   :  { %v299_v4 = vmul.f32 0.0078125, %v296_v3 }
 0x45b   :  { %v298_v5 = vpop.xlane.xlu1 %297 }
 0x45c   :  { %v301_v6 = vadd.f32 1e-05, %v299_v4  ;;  %v300_v7 = vmul.f32 0.0078125, %v298_v5 }
 0x45e   :  { %566 = vrsqrt.f32 %v301_v6  ;;  %v302_v8 = vadd.f32 1e-05, %v300_v7 }
 0x460   :  { %568 = vrsqrt.f32 %v302_v8 }
 0x468   :  { %v567_v9 = vpop.eup %566 }
 0x469   :  { %v305_v11 = vmul.f32 %v567_v9, %v291_v56 }
 0x46a   :  { %v569_v10 = vpop.eup %568 }
 0x46b   :  { %v306_v12 = vmul.f32 %v569_v10, %v292_v58 }
 0x46d   :  { %v307_v13 = vpack.c.bf16 %v306_v12, %v305_v11 }
 0x46f   :  { %532 = vmatmul.mubr.bf16.vlgmr.msra.gmra.mrb[4].mxu0 %v307_v13 }
 0x542   :  { %v413_v0 = vpop.f32.mrb[4].mxu0 }
 0x543   :  { %v414_v15 = vadd.f32 %v460_v14, %v413_v0  ;;  %v533_v16 = vpop.f32.mrb[5].mxu0 }
 0x544   :  { %v416_v17 = vpop.f32.mrb[6].mxu0 }
 0x545   :  { %v417_v18 = vadd.f32 %v460_v14, %v416_v17  ;;  %420 = vmax.xlane.f32.xlu0 %v414_v15  ;;  %v534_v19 = vpop.f32.mrb[7].mxu0 }
 0x547   :  { %422 = vmax.xlane.f32.xlu1 %v417_v18 }
 0x5d2   :  { %v421_v20 = vpop.xlane.xlu0 %420 }
 0x5d3   :  { %v424_v21 = vsub.f32 %v414_v15, %v421_v20 }
 0x5d4   :  { %v423_v22 = vpop.xlane.xlu1 %422 }
 0x5d5   :  { %v426_v23 = vmul.f32 1.442695, %v424_v21  ;;  %v425_v24 = vsub.f32 %v417_v18, %v423_v22 }
 0x5d7   :  { %570 = vpow2.f32 %v426_v23  ;;  %v428_v25 = vmul.f32 1.442695, %v425_v24 }
 0x5d9   :  { %572 = vpow2.f32 %v428_v25 }
 0x5e1   :  { %v571_v26 = vpop.eup %570 }
 0x5e2   :  { %430 = vadd.xlane.f32.xlu0 %v571_v26 }
 0x5e3   :  { %v573_v27 = vpop.eup %572 }
 0x5e4   :  { %432 = vadd.xlane.f32.xlu1 %v573_v27 }
 0x66f   :  { %v431_v28 = vpop.xlane.xlu0 %430 }
 0x670   :  { %574 = vrcp.f32 %v431_v28 }
 0x671   :  { %v433_v29 = vpop.xlane.xlu1 %432 }
 0x672   :  { %576 = vrcp.f32 %v433_v29 }
 0x67a   :  { %v575_v30 = vpop.eup %574 }
 0x67b   :  { %v435_v31 = vmul.f32 %v575_v30, %v571_v26 }
 0x67c   :  { %v577_v32 = vpop.eup %576 }
 0x67d   :  { %439 = vst.msk [vmem:[%s828_s7] sm:$0xff] %vm438_vm2, %v435_v31  ;;  %v437_v33 = vmul.f32 %v577_v32, %v573_v27 }
 0x67f   :  { %440 = vst.msk [vmem:[%s828_s7 + $0x8] sm:$0xff] %vm438_vm2, %v437_v33 }
 0x680   :  { %445 = vsyncpa [#allocation3], 1 }
 0x681   :  { %446 = vsyncpa [#allocation5], 1 }
 0x682   :  { %447 = vsyncpa [#allocation8], 1 }

</bundles_post_ra>
